<compile_context>
chip_gen: v6e
topology: v6e:2x2x1
jax: 0.10.0
libtpu: 0.0.40
codegen_flags: <defaults>
</compile_context>

<pallas_src>
import jax
import jax.numpy as jnp
from jax import lax
from jax.experimental import pallas as pl
from jax.experimental.pallas import tpu as pltpu


def _round_up(x, m):
    return (x + m - 1) // m * m


def vit_embeddings_kernel(patches_ref, w_ref, posb_ref, out_ref):
    # patches_ref: (Bt, S, Kp)  flattened patches; row 0 of each image is zeros
    # w_ref:       (Kp, H)      flattened conv weight (transposed), K zero-padded
    # posb_ref:    (S, H)       row 0 = cls_token + pos[0]; rows 1.. = pos[1:] + conv_b
    # out_ref:     (Bt, S, H)
    bt = patches_ref.shape[0]
    w = w_ref[...]
    posb = posb_ref[...]

    def per_image(i, carry):
        proj = jnp.dot(patches_ref[i], w, preferred_element_type=jnp.float32)
        # Zero placeholder row @ W == 0, so adding posb row 0 reproduces the
        # CLS embedding -> one aligned, full-slab store per image (no offset-1
        # sublane store, no concatenate).
        out_ref[i] = (proj + posb).astype(out_ref.dtype)
        return carry

    lax.fori_loop(0, bt, per_image, None, unroll=True)


def _tpu_generation_budget():
    """Returns (vmem_limit_bytes, num_tensorcores) tuned per TPU generation."""
    try:
        info = pltpu.get_tpu_info()
        vmem_phys = int(getattr(info, "vmem_capacity_bytes", 0)) or (128 << 20)
    except Exception:
        return 48 << 20, 1                     # conservative fallback
    if vmem_phys <= (64 << 20):                # v7x: 64 MiB / TC, 2 TCs per chip
        return 48 << 20, 2
    return 100 << 20, 1                        # v5e / v6e: 128 MiB, 1 TC


def _pick_block_batch(B, S, Kp, hidden, in_itemsize, out_itemsize,
                      vmem_budget_bytes, num_tc):
    """Largest divisor of B whose pipelined buffers fit the VMEM budget.

    Stops growing once Bt*S >= ~512 rows (enough per-step work to amortize the
    ~0.35us step overhead).  On 2-TC chips (v7x) prefers >= 2 grid steps per
    TensorCore so each core's pipeline can overlap prefetch/writeback; on
    1-TC chips (v5e/v6e) Bt is never shrunk for step count.
    """
    divisors = [d for d in range(1, B + 1) if B % d == 0]

    def vmem_need(bt):
        return (2 * bt * S * Kp * in_itemsize          # patches   (double-buffered)
                + 2 * bt * S * hidden * out_itemsize   # output    (double-buffered)
                + bt * S * hidden * 4                  # f32 MXU result before cast
                + 2 * Kp * hidden * in_itemsize        # weight    (const idx, 2x alloc)
                + 2 * S * hidden * 4)                  # pos/cls + bias (const idx, 2x)

    best = 1
    for d in divisors:
        if vmem_need(d) > vmem_budget_bytes:
            break
        best = d
        if d * S >= 512:
            break

    if num_tc >= 2:
        min_steps = 2 * num_tc
        if B // best < min_steps:
            smaller = [d for d in divisors if d < best and B // d >= min_steps]
            if smaller:
                best = smaller[-1]
    return best


def vit_embeddings(pixel_values, conv_w, conv_b, cls_token, pos_emb, patch_size,
                   *, compute_dtype=jnp.bfloat16, out_dtype=None, block_batch=None):
    """pixel_values: [B, C, H, W] (NCHW). Returns [B, num_patches+1, hidden]."""
    B, C, H_img, W_img = pixel_values.shape
    P = patch_size
    nph, npw = H_img // P, W_img // P
    NP = nph * npw
    hidden = conv_w.shape[0]
    K = C * P * P
    Kp = _round_up(K, 128)          # lane-dense loads / clean MXU K tiling
    S = NP + 1
    if out_dtype is None:
        # Explicit output dtype: default to the parameter dtype (f32), never the
        # pixel dtype (uint8 pixels must not silently quantize the embeddings).
        out_dtype = pos_emb.dtype

    # --- glue: patchify (reshape/transpose, executed once by XLA) ---
    # [B,C,nph,P,npw,P] -> [B,nph,npw,C,P,P] -> [B,NP,K]; one jnp.pad then
    # prepends the zero CLS-placeholder row and zero-pads K up to Kp (fuses
    # with the transpose materialization).
    # TODO(synk): NHWC / pre-patchified inputs make this transpose a pure
    # reshape and remove the extra HBM round trip of B*NP*K bytes.
    patches = pixel_values.reshape(B, C, nph, P, npw, P)
    patches = patches.transpose(0, 2, 4, 1, 3, 5).reshape(B, NP, K)
    patches = jnp.pad(patches.astype(compute_dtype),
                      ((0, 0), (1, 0), (0, Kp - K)))            # (B, S, Kp)

    # conv weight [hidden, C, P, P] -> [Kp, hidden] so that patch @ w == conv.
    w_flat = conv_w.reshape(hidden, K).T.astype(compute_dtype)
    w_flat = jnp.pad(w_flat, ((0, Kp - K), (0, 0)))             # (Kp, hidden)

    # Fold conv bias into the patch-row position embeddings and (cls + pos[0])
    # into row 0 so the kernel's add after the matmul produces the full
    # sequence in one aligned store.
    pos2d = pos_emb.reshape(S, hidden).astype(jnp.float32)
    posb = jnp.concatenate(
        [cls_token.reshape(1, hidden).astype(jnp.float32) + pos2d[0:1],
         pos2d[1:] + conv_b.reshape(1, hidden).astype(jnp.float32)],
        axis=0)                                                 # (S, hidden)

    vmem_limit_bytes, num_tc = _tpu_generation_budget()
    in_itemsize = jnp.dtype(compute_dtype).itemsize
    out_itemsize = jnp.dtype(out_dtype).itemsize
    if block_batch is None:
        Bt = _pick_block_batch(B, S, Kp, hidden, in_itemsize, out_itemsize,
                               int(0.85 * vmem_limit_bytes), num_tc)
    else:
        Bt = block_batch
    assert B % Bt == 0, "block_batch must divide the batch size"
    grid = (B // Bt,)

    cost = pl.CostEstimate(
        flops=2 * B * S * Kp * hidden,
        transcendentals=0,
        bytes_accessed=int(B * S * Kp * in_itemsize
                           + Kp * hidden * in_itemsize
                           + S * hidden * 4
                           + B * S * hidden * out_itemsize))

    # NOTE: hidden < 128 (toy configs) under-fills lanes -> masked stores; real
    # ViT hidden sizes (multiples of 128) keep the output lane-dense.
    # NOTE: weight/posb have constant index_maps (fetched once); single
    # buffering them (pipeline_mode=pl.Buffered(1)) would halve their VMEM
    # footprint — the budget above conservatively charges the 2x allocation.
    out = pl.pallas_call(
        vit_embeddings_kernel,
        out_shape=jax.ShapeDtypeStruct((B, S, hidden), out_dtype),
        grid_spec=pltpu.PrefetchScalarGridSpec(
            num_scalar_prefetch=0,
            grid=grid,
            in_specs=[
                pl.BlockSpec((Bt, S, Kp), lambda b: (b, 0, 0)),
                pl.BlockSpec((Kp, hidden), lambda b: (0, 0)),
                pl.BlockSpec((S, hidden), lambda b: (0, 0)),
            ],
            out_specs=pl.BlockSpec((Bt, S, hidden), lambda b: (b, 0, 0)),
        ),
        compiler_params=pltpu.CompilerParams(
            dimension_semantics=("parallel",),
            vmem_limit_bytes=int(vmem_limit_bytes)),
        cost_estimate=cost,
    )(patches, w_flat, posb)
    return out


def vit_embeddings_ref(pixel_values, conv_w, conv_b, cls_token, pos_emb, patch_size):
    """Pure-JAX reference mirroring the PyTorch forward."""
    B, C, H, W = pixel_values.shape
    P = patch_size
    nph, npw = H // P, W // P
    NP = nph * npw
    hidden = conv_w.shape[0]
    patches = pixel_values.reshape(B, C, nph, P, npw, P)
    patches = patches.transpose(0, 2, 4, 1, 3, 5).reshape(B, NP, C * P * P)
    proj = patches @ conv_w.reshape(hidden, -1).T + conv_b  # [B, NP, hidden]
    cls = jnp.broadcast_to(cls_token.reshape(1, 1, hidden), (B, 1, hidden))
    emb = jnp.concatenate([cls, proj], axis=1)
    return emb + pos_emb.reshape(1, NP + 1, hidden)


if __name__ == "__main__":
    # small config: image=16, patch=4, channels=4, hidden=32, batch=2
    B, C, IMG, P, HID = 2, 4, 16, 4, 32
    NP = (IMG // P) * (IMG // P)  # 16 patches, S = 17

    key = jax.random.PRNGKey(0)
    k0, k1, k2, k3, k4 = jax.random.split(key, 5)
    pixel_values = jax.random.normal(k0, (B, C, IMG, IMG), dtype=jnp.float32)
    conv_w = jax.random.normal(k1, (HID, C, P, P), dtype=jnp.float32) * 0.02
    conv_b = jax.random.normal(k2, (HID,), dtype=jnp.float32) * 0.02
    cls_token = jax.random.normal(k3, (1, 1, HID), dtype=jnp.float32)
    pos_emb = jax.random.normal(k4, (1, NP + 1, HID), dtype=jnp.float32)

    ref = vit_embeddings_ref(pixel_values, conv_w, conv_b, cls_token, pos_emb, P)

    # f32 MXU path, f32 output: tight tolerance vs. reference.
    out_f32 = vit_embeddings(pixel_values, conv_w, conv_b, cls_token, pos_emb, P,
                             compute_dtype=jnp.float32, out_dtype=jnp.float32)
    out_f32 = jax.block_until_ready(out_f32)
    assert out_f32.shape == (B, NP + 1, HID)
    assert jnp.allclose(out_f32, ref, atol=1e-5, rtol=1e-5)

    # bf16 MXU inputs (default, f32 accumulate), f32 output.
    out_bf16 = vit_embeddings(pixel_values, conv_w, conv_b, cls_token, pos_emb, P)
    out_bf16 = jax.block_until_ready(out_bf16)
    assert out_bf16.shape == (B, NP + 1, HID)
    assert jnp.allclose(out_bf16, ref, atol=2e-2, rtol=2e-2)

    # bf16 output: halves the writeback bytes (largest single HBM stream).
    out_bf16o = vit_embeddings(pixel_values, conv_w, conv_b, cls_token, pos_emb, P,
                               out_dtype=jnp.bfloat16)
    out_bf16o = jax.block_until_ready(out_bf16o)
    assert out_bf16o.dtype == jnp.bfloat16
    assert jnp.allclose(out_bf16o.astype(jnp.float32), ref, atol=5e-2, rtol=5e-2)

    print("KERNEL_OK")
</pallas_src>

<mosaic_0001>
module attributes {stable_mosaic.version = 11 : i64} {
  func.func @vit_embeddings_kernel(%arg0: i32, %arg1: memref<2x17x128xf32, #tpu.memory_space<vmem>>, %arg2: memref<128x32xf32, #tpu.memory_space<vmem>>, %arg3: memref<17x32xf32, #tpu.memory_space<vmem>>, %arg4: memref<2x17x32xf32, #tpu.memory_space<vmem>>) attributes {dimension_semantics = [#tpu.dimension_semantics<parallel>], iteration_bounds = array<i64: 1>, scalar_prefetch = 0 : i64, scratch_operands = 0 : i64, tpu.core_type = #tpu.core_type<tc>, window_params = [{transform_indices = @transform_0, window_bounds = array<i64: 2, 17, 128>}, {pipeline_mode = #tpu.pipeline_mode<synchronous>, transform_indices = @transform_1, window_bounds = array<i64: 128, 32>}, {pipeline_mode = #tpu.pipeline_mode<synchronous>, transform_indices = @transform_2, window_bounds = array<i64: 17, 32>}, {transform_indices = @transform_3, window_bounds = array<i64: 2, 17, 32>}]} {
    %c0 = arith.constant 0 : index
    %c0_0 = arith.constant 0 : index
    %0 = vector.load %arg2[%c0, %c0_0] : memref<128x32xf32, #tpu.memory_space<vmem>>, vector<128x32xf32>
    %c0_1 = arith.constant 0 : index
    %c0_2 = arith.constant 0 : index
    %1 = vector.load %arg3[%c0_1, %c0_2] : memref<17x32xf32, #tpu.memory_space<vmem>>, vector<17x32xf32>
    %c0_i32 = arith.constant 0 : i32
    %2 = arith.index_cast %c0_i32 : i32 to index
    %c0_3 = arith.constant 0 : index
    %c0_4 = arith.constant 0 : index
    %3 = vector.load %arg1[%2, %c0_3, %c0_4] : memref<2x17x128xf32, #tpu.memory_space<vmem>>, vector<1x17x128xf32>
    %4 = vector.shape_cast %3 : vector<1x17x128xf32> to vector<17x128xf32>
    %cst = arith.constant dense<0.000000e+00> : vector<17x32xf32>
    %5 = tpu.matmul %4, %0, %cst {dimension_numbers = #tpu.dot_dimension_numbers<[1], [0], [0], [1], [0, 0, 1, 1], [], []>} : vector<17x128xf32>, vector<128x32xf32>, vector<17x32xf32> -> vector<17x32xf32>
    %6 = arith.addf %5, %1 : vector<17x32xf32>
    %7 = arith.index_cast %c0_i32 : i32 to index
    %c0_5 = arith.constant 0 : index
    %c0_6 = arith.constant 0 : index
    %8 = vector.load %arg4[%7, %c0_5, %c0_6] : memref<2x17x32xf32, #tpu.memory_space<vmem>>, vector<1x17x32xf32>
    %9 = vector.shape_cast %8 : vector<1x17x32xf32> to vector<17x32xf32>
    %10 = vector.shape_cast %6 : vector<17x32xf32> to vector<1x17x32xf32>
    tpu.vector_store %arg4[%7, %c0_5, %c0_6], %10 {strides = array<i32>} : memref<2x17x32xf32, #tpu.memory_space<vmem>>, vector<1x17x32xf32>,
    %c1_i32 = arith.constant 1 : i32
    %11 = arith.index_cast %c1_i32 : i32 to index
    %c0_7 = arith.constant 0 : index
    %c0_8 = arith.constant 0 : index
    %12 = vector.load %arg1[%11, %c0_7, %c0_8] : memref<2x17x128xf32, #tpu.memory_space<vmem>>, vector<1x17x128xf32>
    %13 = vector.shape_cast %12 : vector<1x17x128xf32> to vector<17x128xf32>
    %cst_9 = arith.constant dense<0.000000e+00> : vector<17x32xf32>
    %14 = tpu.matmul %13, %0, %cst_9 {dimension_numbers = #tpu.dot_dimension_numbers<[1], [0], [0], [1], [0, 0, 1, 1], [], []>} : vector<17x128xf32>, vector<128x32xf32>, vector<17x32xf32> -> vector<17x32xf32>
    %15 = arith.addf %14, %1 : vector<17x32xf32>
    %16 = arith.index_cast %c1_i32 : i32 to index
    %c0_10 = arith.constant 0 : index
    %c0_11 = arith.constant 0 : index
    %17 = vector.load %arg4[%16, %c0_10, %c0_11] : memref<2x17x32xf32, #tpu.memory_space<vmem>>, vector<1x17x32xf32>
    %18 = vector.shape_cast %17 : vector<1x17x32xf32> to vector<17x32xf32>
    %19 = vector.shape_cast %15 : vector<17x32xf32> to vector<1x17x32xf32>
    tpu.vector_store %arg4[%16, %c0_10, %c0_11], %19 {strides = array<i32>} : memref<2x17x32xf32, #tpu.memory_space<vmem>>, vector<1x17x32xf32>,
    %c2_i32 = arith.constant 2 : i32
    return
  }
  func.func @transform_0(%arg0: i32) -> (i32, i32, i32) {
    %c0_i32 = arith.constant 0 : i32
    %c0_i32_0 = arith.constant 0 : i32
    %c0_i32_1 = arith.constant 0 : i32
    return %arg0, %c0_i32, %c0_i32_0 : i32, i32, i32
  }
  func.func @transform_1(%arg0: i32) -> (i32, i32) {
    %c0_i32 = arith.constant 0 : i32
    %c0_i32_0 = arith.constant 0 : i32
    %c0_i32_1 = arith.constant 0 : i32
    return %c0_i32, %c0_i32_0 : i32, i32
  }
  func.func @transform_2(%arg0: i32) -> (i32, i32) {
    %c0_i32 = arith.constant 0 : i32
    %c0_i32_0 = arith.constant 0 : i32
    %c0_i32_1 = arith.constant 0 : i32
    return %c0_i32, %c0_i32_0 : i32, i32
  }
  func.func @transform_3(%arg0: i32) -> (i32, i32, i32) {
    %c0_i32 = arith.constant 0 : i32
    %c0_i32_0 = arith.constant 0 : i32
    %c0_i32_1 = arith.constant 0 : i32
    return %arg0, %c0_i32, %c0_i32_0 : i32, i32, i32
  }
}

</mosaic_0001>

<bundles_post_ra>
// kernel: tpu_custom_call.1
= control target key start
LH: loop header
LB: loop body
LE: loop exit
PB: predicated region body
PF: predicated region fallthrough
CT: control target
= control target key end

     0   :  { %v341_v0 = vmov 0.0   ;;  %vm342_vm0 = vmmov 0   ;;  %vm116_vm1 = vcmask 261120   ;;  %vm119_vm2 = vcmask 253952   ;;  %s498_s1 = inlined_call_operand.vmem [shape: f32[128,32], index: 1, kind: input, shape index: {}]   ;;  %s499_s0 = inlined_call_operand.vmem [shape: f32[2,17,128], index: 0, kind: input, shape index: {}]   ;;  %s500_s2 = inlined_call_operand.vmem [shape: f32[17,32], index: 2, kind: input, shape index: {}]   ;;  %s501_s3 = inlined_call_operand.vmem [shape: f32[2,17,32], index: 3, kind: output, shape index: {}]  }
   0x1   :  { %257 = vmatprep.subr.mxu0 %v341_v0  ;;  %298 = vmatprep.subr.mxu1 %v341_v0  ;;  %v29_v1 = vld [vmem:[%s498_s1 + $0x78] sm:$0xff]  ;;  %v28_v2 = vld [vmem:[%s498_s1 + $0x70] sm:$0xff]  ;;  %v27_v3 = vld [vmem:[%s498_s1 + $0x68] sm:$0xff] }
   0x2   :  { %258 = vmatpush3.msra.mxu0 %v29_v1  ;;  %299 = vmatpush3.msra.mxu1 %v29_v1  ;;  %v26_v4 = vld [vmem:[%s498_s1 + $0x60] sm:$0xff]  ;;  %v25_v5 = vld [vmem:[%s498_s1 + $0x58] sm:$0xff]  ;;  %v24_v6 = vld [vmem:[%s498_s1 + $0x50] sm:$0xff] }
   0x3   :  { %259 = vmatprep.subr.mxu0 %v341_v0  ;;  %300 = vmatprep.subr.mxu1 %v341_v0  ;;  %v23_v7 = vld [vmem:[%s498_s1 + $0x48] sm:$0xff]  ;;  %v22_v8 = vld [vmem:[%s498_s1 + $0x40] sm:$0xff]  ;;  %v21_v9 = vld [vmem:[%s498_s1 + $0x38] sm:$0xff] }
   0x4   :  { %260 = vmatpush3.msra.mxu0 %v28_v2  ;;  %301 = vmatpush3.msra.mxu1 %v28_v2  ;;  %v20_v10 = vld [vmem:[%s498_s1 + $0x30] sm:$0xff]  ;;  %v19_v11 = vld [vmem:[%s498_s1 + $0x28] sm:$0xff]  ;;  %v18_v12 = vld [vmem:[%s498_s1 + $0x20] sm:$0xff] }
   0x5   :  { %261 = vmatprep.subr.mxu0 %v341_v0  ;;  %302 = vmatprep.subr.mxu1 %v341_v0  ;;  %v17_v13 = vld [vmem:[%s498_s1 + $0x18] sm:$0xff]  ;;  %v16_v14 = vld [vmem:[%s498_s1 + $0x10] sm:$0xff]  ;;  %v15_v15 = vld [vmem:[%s498_s1 + $0x8] sm:$0xff] }
   0x6   :  { %262 = vmatpush3.msra.mxu0 %v27_v3  ;;  %303 = vmatpush3.msra.mxu1 %v27_v3  ;;  %v14_v16 = vld [vmem:[%s498_s1] sm:$0xff]  ;;  %v213_v18 = vld [vmem:[%s499_s0 + $0x18] sm:$0xff]  ;;  %v34_v19 = vld [vmem:[%s499_s0 + $0x8] sm:$0xff] }
   0x7   :  { %263 = vmatprep.subr.mxu0 %v341_v0  ;;  %304 = vmatprep.subr.mxu1 %v341_v0  ;;  %v33_v17 = vld [vmem:[%s499_s0] sm:$0xff]  ;;  %v35_v21 = vld [vmem:[%s499_s0 + $0x10] sm:$0x1]  ;;  %v215_v22 = vld [vmem:[%s499_s0 + $0x28] sm:$0x1] }
   0x8   :  { %264 = vmatpush3.msra.mxu0 %v26_v4  ;;  %305 = vmatpush3.msra.mxu1 %v26_v4  ;;  %v214_v20 = vld [vmem:[%s499_s0 + $0x20] sm:$0xff]  ;;  %v31_v30 = vld [vmem:[%s500_s2 + $0x8] sm:$0xff]  ;;  %v32_v37 = vld [vmem:[%s500_s2 + $0x10] sm:$0x1] }
   0x9   :  { %265 = vmatprep.subr.mxu0 %v341_v0  ;;  %306 = vmatprep.subr.mxu1 %v341_v0  ;;  %v30_v23 = vld [vmem:[%s500_s2] sm:$0xff] }
   0xa   :  { %266 = vmatpush3.msra.mxu0 %v25_v5  ;;  %307 = vmatpush3.msra.mxu1 %v25_v5 }
   0xb   :  { %267 = vmatprep.subr.mxu0 %v341_v0  ;;  %308 = vmatprep.subr.mxu1 %v341_v0 }
   0xc   :  { %268 = vmatpush3.msra.mxu0 %v24_v6  ;;  %309 = vmatpush3.msra.mxu1 %v24_v6 }
   0xd   :  { %269 = vmatprep.subr.mxu0 %v341_v0  ;;  %310 = vmatprep.subr.mxu1 %v341_v0 }
   0xe   :  { %270 = vmatpush3.msra.mxu0 %v23_v7  ;;  %311 = vmatpush3.msra.mxu1 %v23_v7 }
   0xf   :  { %271 = vmatprep.subr.mxu0 %v341_v0  ;;  %312 = vmatprep.subr.mxu1 %v341_v0 }
  0x10   :  { %272 = vmatpush3.msra.mxu0 %v22_v8  ;;  %313 = vmatpush3.msra.mxu1 %v22_v8 }
  0x11   :  { %273 = vmatprep.subr.mxu0 %v341_v0  ;;  %314 = vmatprep.subr.mxu1 %v341_v0 }
  0x12   :  { %274 = vmatpush3.msra.mxu0 %v21_v9  ;;  %315 = vmatpush3.msra.mxu1 %v21_v9 }
  0x13   :  { %275 = vmatprep.subr.mxu0 %v341_v0  ;;  %316 = vmatprep.subr.mxu1 %v341_v0 }
  0x14   :  { %276 = vmatpush3.msra.mxu0 %v20_v10  ;;  %317 = vmatpush3.msra.mxu1 %v20_v10 }
  0x15   :  { %277 = vmatprep.subr.mxu0 %v341_v0  ;;  %318 = vmatprep.subr.mxu1 %v341_v0 }
  0x16   :  { %278 = vmatpush3.msra.mxu0 %v19_v11  ;;  %319 = vmatpush3.msra.mxu1 %v19_v11 }
  0x17   :  { %279 = vmatprep.subr.mxu0 %v341_v0  ;;  %320 = vmatprep.subr.mxu1 %v341_v0 }
  0x18   :  { %280 = vmatpush3.msra.mxu0 %v18_v12  ;;  %321 = vmatpush3.msra.mxu1 %v18_v12 }
  0x19   :  { %281 = vmatprep.subr.mxu0 %v341_v0  ;;  %322 = vmatprep.subr.mxu1 %v341_v0 }
  0x1a   :  { %282 = vmatpush3.msra.mxu0 %v17_v13  ;;  %323 = vmatpush3.msra.mxu1 %v17_v13 }
  0x1b   :  { %283 = vmatprep.subr.mxu0 %v341_v0  ;;  %324 = vmatprep.subr.mxu1 %v341_v0 }
  0x1c   :  { %284 = vmatpush3.msra.mxu0 %v16_v14  ;;  %325 = vmatpush3.msra.mxu1 %v16_v14 }
  0x1d   :  { %285 = vmatprep.subr.mxu0 %v341_v0  ;;  %326 = vmatprep.subr.mxu1 %v341_v0 }
  0x1e   :  { %286 = vmatpush3.msra.mxu0 %v15_v15  ;;  %327 = vmatpush3.msra.mxu1 %v15_v15 }
  0x1f   :  { %287 = vmatprep.subr.mxu0 %v341_v0  ;;  %328 = vmatprep.subr.mxu1 %v341_v0 }
  0x20   :  { %288 = vmatpush3.msra.mxu0 %v14_v16  ;;  %289 = vmatprep.mubr.msk.f32.mxu0 %vm342_vm0, %v341_v0 }
  0x21   :  { %329 = vmatpush3.msra.mxu1 %v14_v16  ;;  %330 = vmatprep.mubr.msk.f32.mxu1 %vm342_vm0, %v341_v0 }
  0x22   :  { %290 = vmatmul.mubr.f32.vlgmr.msra.gmra.mxu0 %v33_v17  ;;  %331 = vmatmul.mubr.f32.vlgmr.msra.gmra.mxu1 %v213_v18 }
  0x23   :  { %292 = vmatprep.mubr.msk.f32.mxu0 %vm342_vm0, %v341_v0  ;;  %333 = vmatprep.mubr.msk.f32.mxu1 %vm342_vm0, %v341_v0 }
  0x26   :  { %293 = vmatmul.mubr.f32.gmra.mxu0 %v34_v19  ;;  %334 = vmatmul.mubr.f32.gmra.mxu1 %v214_v20 }
  0x27   :  { %295 = vmatprep.mubr.msk.f32.mxu0 %vm342_vm0, %v341_v0  ;;  %336 = vmatprep.mubr.msk.f32.mxu1 %vm342_vm0, %v341_v0 }
  0x2a   :  { %296 = vmatmul.mubr.f32.gmra.mxu0 %v35_v21  ;;  %337 = vmatmul.mubr.f32.gmra.mxu1 %v215_v22 }
  0xe2   :  { %v102_v24 = vpop.f32.mrf.mxu0  ;;  %v191_v25 = vpop.f32.mrf.mxu1 }
  0xe3   :  { %v103_v26 = vadd.f32 %v102_v24, %v30_v23  ;;  %v192_v27 = vadd.f32 %v191_v25, %v30_v23 }
  0xe4   :  { %v291_v28 = vpop.f32.mrf.mxu0  ;;  %v332_v29 = vpop.f32.mrf.mxu1 }
  0xe5   :  { %117 = vst.msk [vmem:[%s501_s3] sm:$0xff] %vm116_vm1, %v103_v26  ;;  %216 = vst.msk [vmem:[%s501_s3 + $0x18] sm:$0xff] %vm116_vm1, %v192_v27 }
  0xe6   :  { %v107_v31 = vpop.f32.mrf.mxu0  ;;  %v196_v32 = vpop.f32.mrf.mxu1 }
  0xe7   :  { %v108_v33 = vadd.f32 %v107_v31, %v31_v30  ;;  %v197_v34 = vadd.f32 %v196_v32, %v31_v30 }
  0xe8   :  { %v294_v35 = vpop.f32.mrf.mxu0  ;;  %v335_v36 = vpop.f32.mrf.mxu1 }
  0xe9   :  { %118 = vst.msk [vmem:[%s501_s3 + $0x8] sm:$0xff] %vm116_vm1, %v108_v33  ;;  %217 = vst.msk [vmem:[%s501_s3 + $0x20] sm:$0xff] %vm116_vm1, %v197_v34 }
  0xea   :  { %v112_v38 = vpop.f32.mrf.mxu0  ;;  %v201_v39 = vpop.f32.mrf.mxu1 }
  0xeb   :  { %v113_v40 = vadd.f32 %v112_v38, %v32_v37  ;;  %v202_v41 = vadd.f32 %v201_v39, %v32_v37 }
  0xec   :  { %v297_v42 = vpop.f32.mrf.mxu0  ;;  %v338_v43 = vpop.f32.mrf.mxu1 }
  0xed   :  { %120 = vst.msk [vmem:[%s501_s3 + $0x10] sm:$0x1] %vm119_vm2, %v113_v40  ;;  %218 = vst.msk [vmem:[%s501_s3 + $0x28] sm:$0x1] %vm119_vm2, %v202_v41 }

</bundles_post_ra>
